<compile_context>
chip_gen: v7x
topology: tpu7x:2x2x1
jax: 0.10.0
libtpu: 0.0.40
codegen_flags: <defaults>
</compile_context>

<pallas_src>
import functools

import jax
import jax.numpy as jnp
from jax.experimental import pallas as pl
from jax.experimental.pallas import tpu as pltpu


NEG_BIG = -1e9  # bias for padded vocab lanes: exp() underflows to 0, never argmax'd


def _round_up(x, m):
    return ((x + m - 1) // m) * m


def decoder_kernel(
    # --- inputs (all resident in VMEM across the whole decode) ---
    enco_ref,                                     # (Bp, S, H)
    emb0_ref,                                     # (Bp, E) initial embedding
    hid0_ref,                                     # (Bp, H) initial hidden
    attn_we_ref, attn_wh_ref, attn_b_ref,         # (E,S), (H,S), (1,S)
    acom_we_ref, acom_wh_ref, acom_b_ref,         # (E,H2), (H,H2), (1,H2)
    wih_r_ref, wih_z_ref, wih_n_ref,              # (H2,H) each
    whh_r_ref, whh_z_ref, whh_n_ref,              # (H,H) each
    b_r_ref, b_z_ref, b_in_ref, b_hn_ref,         # (1,H) each
    fc2_w_ref, fc2_b_ref,                         # (H,Wp), (1,Wp)
    embed_ref,                                    # (Wp, E)
    # --- outputs ---
    logp_ref,                                     # (1, Bp, Wp) per-step block
    emb_out_ref,                                  # (Bp, E) final embedding
    hid_out_ref,                                  # (Bp, H) final hidden
    # --- scratch (persists across grid steps) ---
    emb_sc,                                       # (Bp, E)
    hid_sc,                                       # (Bp, H)
):
    t = pl.program_id(0)

    @pl.when(t == 0)
    def _():
        emb_sc[...] = emb0_ref[...]
        hid_sc[...] = hid0_ref[...]

    emb = emb_sc[...]      # (Bp, E)
    hid = hid_sc[...]      # (Bp, H)

    dot = functools.partial(jnp.dot, preferred_element_type=jnp.float32)

    # --- attn = Linear(E+H -> S), softmax over S (concat split into 2 dots) ---
    aw = dot(emb, attn_we_ref[...]) + dot(hid, attn_wh_ref[...]) + attn_b_ref[...]
    aw = jnp.exp(aw - jnp.max(aw, axis=1, keepdims=True))
    aw = aw * pl.reciprocal(jnp.sum(aw, axis=1, keepdims=True), approx=False)

    # --- attn_applied = bmm(aw.view(B,1,S), enco_out) -> (Bp, H) ---
    attn_applied = jnp.sum(aw[:, :, None] * enco_ref[...], axis=1)

    # --- attn_com + relu (concat split into 2 dots) ---
    y = dot(emb, acom_we_ref[...]) + dot(attn_applied, acom_wh_ref[...]) + acom_b_ref[...]
    y = jnp.maximum(y, 0.0)                                            # (Bp, H//2)

    # --- one GRU step; PyTorch gate order (r, z, n), per-gate weights ---
    r = jax.nn.sigmoid(dot(y, wih_r_ref[...]) + dot(hid, whh_r_ref[...]) + b_r_ref[...])
    z = jax.nn.sigmoid(dot(y, wih_z_ref[...]) + dot(hid, whh_z_ref[...]) + b_z_ref[...])
    n = jnp.tanh(dot(y, wih_n_ref[...]) + b_in_ref[...]
                 + r * (dot(hid, whh_n_ref[...]) + b_hn_ref[...]))
    h_new = (1.0 - z) * n + z * hid                                    # (Bp, H)

    # --- fc2 + log_softmax over (lane-padded) vocab ---
    logits = dot(h_new, fc2_w_ref[...]) + fc2_b_ref[...]               # (Bp, Wp)
    shifted = logits - jnp.max(logits, axis=1, keepdims=True)
    logp = shifted - jnp.log(jnp.sum(jnp.exp(shifted), axis=1, keepdims=True))

    # --- greedy argmax (first-max, torch.max semantics) -> one-hot -> embedding ---
    # TODO(synk): for large vocabularies replace the one-hot matmul with an
    # SMEM-index gather / DMA row copy; at Wp=128 the matmul is cheaper.
    Wp = logits.shape[1]
    iota = jax.lax.broadcasted_iota(jnp.int32, logp.shape, 1)
    maxv = jnp.max(logp, axis=1, keepdims=True)
    idx = jnp.min(jnp.where(logp == maxv, iota, jnp.int32(Wp)), axis=1)  # (Bp,)
    onehot = (iota == idx[:, None]).astype(jnp.float32)                  # (Bp, Wp)
    emb_new = dot(onehot, embed_ref[...])                                # (Bp, E)

    logp_ref[0] = logp
    emb_sc[...] = emb_new
    hid_sc[...] = h_new
    emb_out_ref[...] = emb_new
    hid_out_ref[...] = h_new


def _kernel_weights(params, word_len, w_pad, embed_size, hidden_size):
    """Split concat/gate weights and pad the vocab dimension to `w_pad` lanes."""
    E, H = embed_size, hidden_size
    attn_w = params["attn_w"]                # (E+H, S)
    acom_w = params["attn_com_w"]            # (E+H, H//2)
    w_ih, w_hh = params["w_ih"], params["w_hh"]          # (H//2,3H), (H,3H)  r|z|n
    b_ih, b_hh = params["b_ih"], params["b_hh"]          # (1,3H)

    attn_we, attn_wh = attn_w[:E], attn_w[E:]
    acom_we, acom_wh = acom_w[:E], acom_w[E:]
    wih_r, wih_z, wih_n = w_ih[:, :H], w_ih[:, H:2 * H], w_ih[:, 2 * H:]
    whh_r, whh_z, whh_n = w_hh[:, :H], w_hh[:, H:2 * H], w_hh[:, 2 * H:]
    b_r = b_ih[:, :H] + b_hh[:, :H]
    b_z = b_ih[:, H:2 * H] + b_hh[:, H:2 * H]
    b_in = b_ih[:, 2 * H:]
    b_hn = b_hh[:, 2 * H:]

    pad_w = w_pad - word_len
    fc2_w = jnp.pad(params["fc2_w"], ((0, 0), (0, pad_w)))
    fc2_b = jnp.pad(params["fc2_b"], ((0, 0), (0, pad_w)), constant_values=NEG_BIG)
    embed = jnp.pad(params["embed"], ((0, pad_w), (0, 0)))

    return (attn_we, attn_wh, params["attn_b"],
            acom_we, acom_wh, params["attn_com_b"],
            wih_r, wih_z, wih_n, whh_r, whh_z, whh_n,
            b_r, b_z, b_in, b_hn,
            fc2_w, fc2_b, embed)


def decoder_decode(enco_out, emb, hid, params, num_steps):
    """Fused greedy decode: `num_steps` Decoder.forward steps in ONE pallas_call.

    State (emb/hid) is carried in VMEM scratch; weights are DMA'd once.
    Returns (logp_all (T,B,W), emb_final (B,1,E), hid_final (1,B,H)).
    """
    B, S, H = enco_out.shape
    E = emb.shape[2]
    W = params["fc2_w"].shape[1]
    Bp = max(8, _round_up(B, 8))     # fill vreg sublanes / MXU rows
    Wp = _round_up(W, 128)           # lane-dense logp stores
    T = int(num_steps)

    enco_p = jnp.pad(enco_out, ((0, Bp - B), (0, 0), (0, 0)))
    emb_p = jnp.pad(emb[0], ((0, Bp - B), (0, 0)))     # (Bp, E)
    hid_p = jnp.pad(hid[0], ((0, Bp - B), (0, 0)))     # (Bp, H)
    weights = _kernel_weights(params, W, Wp, E, H)

    def const2(t):
        return (0, 0)

    def const3(t):
        return (0, 0, 0)

    in_specs = [
        pl.BlockSpec(enco_p.shape, const3),
        pl.BlockSpec(emb_p.shape, const2),
        pl.BlockSpec(hid_p.shape, const2),
    ] + [pl.BlockSpec(w.shape, const2) for w in weights]

    out_shape = (
        jax.ShapeDtypeStruct((T, Bp, Wp), jnp.float32),
        jax.ShapeDtypeStruct((Bp, E), jnp.float32),
        jax.ShapeDtypeStruct((Bp, H), jnp.float32),
    )
    out_specs = (
        pl.BlockSpec((1, Bp, Wp), lambda t: (t, 0, 0)),
        pl.BlockSpec((Bp, E), const2),
        pl.BlockSpec((Bp, H), const2),
    )

    logp_all, emb_f, hid_f = pl.pallas_call(
        decoder_kernel,
        out_shape=out_shape,
        grid_spec=pltpu.PrefetchScalarGridSpec(
            num_scalar_prefetch=0,
            grid=(T,),
            in_specs=in_specs,
            out_specs=out_specs,
            scratch_shapes=[pltpu.VMEM((Bp, E), jnp.float32),
                            pltpu.VMEM((Bp, H), jnp.float32)],
        ),
        compiler_params=pltpu.CompilerParams(
            dimension_semantics=("arbitrary",)),   # sequential state carry
    )(enco_p, emb_p, hid_p, *weights)

    logp = logp_all[:, :B, :W]
    emb_out = emb_f[:B][:, None, :]        # (B, 1, E) — size-1 dim added here
    hid_out = hid_f[None, :B, :]           # (1, B, H)
    return logp, emb_out, hid_out


def decoder_forward(enco_out, emb, hid, params):
    """Single Decoder.forward step (matches the PyTorch module's signature)."""
    logp, emb_out, hid_out = decoder_decode(enco_out, emb, hid, params, num_steps=1)
    return logp[0], emb_out, hid_out


# ----------------------------- pure-JAX references -----------------------------

def decoder_reference(enco_out, emb, hid, params):
    """Pure-JAX reference for one step (mirrors the PyTorch forward)."""
    H = hid.shape[2]
    e, h = emb[0], hid[0]
    x = jnp.concatenate([e, h], axis=1)
    aw = jax.nn.softmax(x @ params["attn_w"] + params["attn_b"], axis=1)
    attn_applied = jnp.einsum("bs,bsh->bh", aw, enco_out)
    y = jnp.concatenate([e, attn_applied], axis=1)
    y = jax.nn.relu(y @ params["attn_com_w"] + params["attn_com_b"])
    gi = y @ params["w_ih"] + params["b_ih"]
    gh = h @ params["w_hh"] + params["b_hh"]
    r = jax.nn.sigmoid(gi[:, :H] + gh[:, :H])
    z = jax.nn.sigmoid(gi[:, H:2 * H] + gh[:, H:2 * H])
    n = jnp.tanh(gi[:, 2 * H:] + r * gh[:, 2 * H:])
    h_new = (1.0 - z) * n + z * h
    logits = h_new @ params["fc2_w"] + params["fc2_b"]
    logp = jax.nn.log_softmax(logits, axis=1)
    idx = jnp.argmax(logp, axis=1)
    emb_new = params["embed"][idx][:, None, :]
    return logp, emb_new, h_new[None]


def decoder_reference_decode(enco_out, emb, hid, params, num_steps):
    """Chain the single-step reference: feed each step's chosen-token embedding
    (reshaped (B,1,E)->(1,B,E)) and hidden state into the next step."""
    logps = []
    emb_b1e = None
    for _ in range(num_steps):
        logp, emb_b1e, hid = decoder_reference(enco_out, emb, hid, params)
        logps.append(logp)
        emb = jnp.transpose(emb_b1e, (1, 0, 2))
    return jnp.stack(logps), emb_b1e, hid


def init_params(key, hidden_size, word_len, sent_limit, embed_size):
    H, E, S, Wd = hidden_size, embed_size, sent_limit, word_len
    ks = jax.random.split(key, 11)

    def u(k, shape, scale=0.1):
        return jax.random.uniform(k, shape, jnp.float32, -scale, scale)

    return dict(
        attn_w=u(ks[0], (E + H, S)),            # attn.weight.T
        attn_b=u(ks[1], (1, S)),
        attn_com_w=u(ks[2], (E + H, H // 2)),   # attn_com.weight.T
        attn_com_b=u(ks[3], (1, H // 2)),
        w_ih=u(ks[4], (H // 2, 3 * H)),         # GRU weight_ih_l0.T  (r|z|n)
        w_hh=u(ks[5], (H, 3 * H)),              # GRU weight_hh_l0.T  (r|z|n)
        b_ih=u(ks[6], (1, 3 * H)),
        b_hh=u(ks[7], (1, 3 * H)),
        fc2_w=u(ks[8], (H, Wd)),                # fc2.weight.T
        fc2_b=u(ks[9], (1, Wd)),
        embed=jax.random.normal(ks[10], (Wd, E), jnp.float32),  # embedding table
        # NOTE: fc1 of the PyTorch module is unused in forward(), so it is omitted.
    )


if __name__ == "__main__":
    B = 2
    hidden_size = 32
    embed_size = 32
    word_len = 64
    sent_limit = 8
    num_steps = 6

    key = jax.random.PRNGKey(0)
    k_enc, k_emb, k_hid, k_par = jax.random.split(key, 4)

    enco_out = jax.random.normal(k_enc, (B, sent_limit, hidden_size), jnp.float32)
    emb_in = jax.random.normal(k_emb, (1, B, embed_size), jnp.float32)
    hid_in = jax.random.normal(k_hid, (1, B, hidden_size), jnp.float32)
    params = init_params(k_par, hidden_size, word_len, sent_limit, embed_size)

    # --- single step: exactly the PyTorch module's forward ---
    logp, emb_out, hid_out = decoder_forward(enco_out, emb_in, hid_in, params)
    jax.block_until_ready((logp, emb_out, hid_out))
    rl, re, rh = decoder_reference(enco_out, emb_in, hid_in, params)
    assert logp.shape == (B, word_len)
    assert emb_out.shape == (B, 1, embed_size)
    assert hid_out.shape == (1, B, hidden_size)
    assert jnp.allclose(logp, rl, atol=1e-4, rtol=1e-4)
    assert jnp.allclose(emb_out, re, atol=1e-4, rtol=1e-4)
    assert jnp.allclose(hid_out, rh, atol=1e-4, rtol=1e-4)

    # --- fused multi-step greedy decode: one pallas_call for all steps ---
    logp_all, emb_f, hid_f = decoder_decode(enco_out, emb_in, hid_in, params, num_steps)
    jax.block_until_ready((logp_all, emb_f, hid_f))
    rlogp_all, remb_f, rhid_f = decoder_reference_decode(
        enco_out, emb_in, hid_in, params, num_steps)
    assert logp_all.shape == (num_steps, B, word_len)
    assert emb_f.shape == (B, 1, embed_size)
    assert hid_f.shape == (1, B, hidden_size)
    assert jnp.allclose(logp_all, rlogp_all, atol=5e-4, rtol=5e-4)
    assert jnp.allclose(emb_f, remb_f, atol=5e-4, rtol=5e-4)
    assert jnp.allclose(hid_f, rhid_f, atol=5e-4, rtol=5e-4)

    print("KERNEL_OK")
</pallas_src>

<mosaic_0001>
module attributes {stable_mosaic.version = 11 : i64} {
  func.func @decoder_kernel(%arg0: i32, %arg1: memref<8x8x32xf32, #tpu.memory_space<vmem>>, %arg2: memref<8x32xf32, #tpu.memory_space<vmem>>, %arg3: memref<8x32xf32, #tpu.memory_space<vmem>>, %arg4: memref<32x8xf32, #tpu.memory_space<vmem>>, %arg5: memref<32x8xf32, #tpu.memory_space<vmem>>, %arg6: memref<1x8xf32, #tpu.memory_space<vmem>>, %arg7: memref<32x16xf32, #tpu.memory_space<vmem>>, %arg8: memref<32x16xf32, #tpu.memory_space<vmem>>, %arg9: memref<1x16xf32, #tpu.memory_space<vmem>>, %arg10: memref<16x32xf32, #tpu.memory_space<vmem>>, %arg11: memref<16x32xf32, #tpu.memory_space<vmem>>, %arg12: memref<16x32xf32, #tpu.memory_space<vmem>>, %arg13: memref<32x32xf32, #tpu.memory_space<vmem>>, %arg14: memref<32x32xf32, #tpu.memory_space<vmem>>, %arg15: memref<32x32xf32, #tpu.memory_space<vmem>>, %arg16: memref<1x32xf32, #tpu.memory_space<vmem>>, %arg17: memref<1x32xf32, #tpu.memory_space<vmem>>, %arg18: memref<1x32xf32, #tpu.memory_space<vmem>>, %arg19: memref<1x32xf32, #tpu.memory_space<vmem>>, %arg20: memref<32x128xf32, #tpu.memory_space<vmem>>, %arg21: memref<1x128xf32, #tpu.memory_space<vmem>>, %arg22: memref<128x32xf32, #tpu.memory_space<vmem>>, %arg23: memref<1x8x128xf32, #tpu.memory_space<vmem>>, %arg24: memref<8x32xf32, #tpu.memory_space<vmem>>, %arg25: memref<8x32xf32, #tpu.memory_space<vmem>>, %arg26: memref<8x32xf32, #tpu.memory_space<vmem>>, %arg27: memref<8x32xf32, #tpu.memory_space<vmem>>) attributes {dimension_semantics = [#tpu.dimension_semantics<arbitrary>], iteration_bounds = array<i64: 1>, scalar_prefetch = 0 : i64, scratch_operands = 2 : i64, tpu.core_type = #tpu.core_type<tc>, window_params = [{pipeline_mode = #tpu.pipeline_mode<synchronous>, transform_indices = @transform_0, window_bounds = array<i64: 8, 8, 32>}, {pipeline_mode = #tpu.pipeline_mode<synchronous>, transform_indices = @transform_1, window_bounds = array<i64: 8, 32>}, {pipeline_mode = #tpu.pipeline_mode<synchronous>, transform_indices = @transform_2, window_bounds = array<i64: 8, 32>}, {pipeline_mode = #tpu.pipeline_mode<synchronous>, transform_indices = @transform_3, window_bounds = array<i64: 32, 8>}, {pipeline_mode = #tpu.pipeline_mode<synchronous>, transform_indices = @transform_4, window_bounds = array<i64: 32, 8>}, {pipeline_mode = #tpu.pipeline_mode<synchronous>, transform_indices = @transform_5, window_bounds = array<i64: 1, 8>}, {pipeline_mode = #tpu.pipeline_mode<synchronous>, transform_indices = @transform_6, window_bounds = array<i64: 32, 16>}, {pipeline_mode = #tpu.pipeline_mode<synchronous>, transform_indices = @transform_7, window_bounds = array<i64: 32, 16>}, {pipeline_mode = #tpu.pipeline_mode<synchronous>, transform_indices = @transform_8, window_bounds = array<i64: 1, 16>}, {pipeline_mode = #tpu.pipeline_mode<synchronous>, transform_indices = @transform_9, window_bounds = array<i64: 16, 32>}, {pipeline_mode = #tpu.pipeline_mode<synchronous>, transform_indices = @transform_10, window_bounds = array<i64: 16, 32>}, {pipeline_mode = #tpu.pipeline_mode<synchronous>, transform_indices = @transform_11, window_bounds = array<i64: 16, 32>}, {pipeline_mode = #tpu.pipeline_mode<synchronous>, transform_indices = @transform_12, window_bounds = array<i64: 32, 32>}, {pipeline_mode = #tpu.pipeline_mode<synchronous>, transform_indices = @transform_13, window_bounds = array<i64: 32, 32>}, {pipeline_mode = #tpu.pipeline_mode<synchronous>, transform_indices = @transform_14, window_bounds = array<i64: 32, 32>}, {pipeline_mode = #tpu.pipeline_mode<synchronous>, transform_indices = @transform_15, window_bounds = array<i64: 1, 32>}, {pipeline_mode = #tpu.pipeline_mode<synchronous>, transform_indices = @transform_16, window_bounds = array<i64: 1, 32>}, {pipeline_mode = #tpu.pipeline_mode<synchronous>, transform_indices = @transform_17, window_bounds = array<i64: 1, 32>}, {pipeline_mode = #tpu.pipeline_mode<synchronous>, transform_indices = @transform_18, window_bounds = array<i64: 1, 32>}, {pipeline_mode = #tpu.pipeline_mode<synchronous>, transform_indices = @transform_19, window_bounds = array<i64: 32, 128>}, {pipeline_mode = #tpu.pipeline_mode<synchronous>, transform_indices = @transform_20, window_bounds = array<i64: 1, 128>}, {pipeline_mode = #tpu.pipeline_mode<synchronous>, transform_indices = @transform_21, window_bounds = array<i64: 128, 32>}, {transform_indices = @transform_22, window_bounds = array<i64: 1, 8, 128>}, {pipeline_mode = #tpu.pipeline_mode<synchronous>, transform_indices = @transform_23, window_bounds = array<i64: 8, 32>}, {pipeline_mode = #tpu.pipeline_mode<synchronous>, transform_indices = @transform_24, window_bounds = array<i64: 8, 32>}]} {
    %c0_i32 = arith.constant 0 : i32
    %0 = arith.cmpi eq, %arg0, %c0_i32 : i32
    %1 = arith.extui %0 : i1 to i32
    %c0_i32_0 = arith.constant 0 : i32
    %2 = arith.cmpi ne, %1, %c0_i32_0 : i32
    scf.if %2 {
      %c0_78 = arith.constant 0 : index
      %c0_79 = arith.constant 0 : index
      %119 = vector.load %arg2[%c0_78, %c0_79] : memref<8x32xf32, #tpu.memory_space<vmem>>, vector<8x32xf32>
      %c0_80 = arith.constant 0 : index
      %c0_81 = arith.constant 0 : index
      %120 = vector.load %arg26[%c0_80, %c0_81] : memref<8x32xf32, #tpu.memory_space<vmem>>, vector<8x32xf32>
      tpu.vector_store %arg26[%c0_80, %c0_81], %119 {strides = array<i32>} : memref<8x32xf32, #tpu.memory_space<vmem>>, vector<8x32xf32>,
      %c0_82 = arith.constant 0 : index
      %c0_83 = arith.constant 0 : index
      %121 = vector.load %arg3[%c0_82, %c0_83] : memref<8x32xf32, #tpu.memory_space<vmem>>, vector<8x32xf32>
      %c0_84 = arith.constant 0 : index
      %c0_85 = arith.constant 0 : index
      %122 = vector.load %arg27[%c0_84, %c0_85] : memref<8x32xf32, #tpu.memory_space<vmem>>, vector<8x32xf32>
      tpu.vector_store %arg27[%c0_84, %c0_85], %121 {strides = array<i32>} : memref<8x32xf32, #tpu.memory_space<vmem>>, vector<8x32xf32>,
    } else {
    }
    %c0 = arith.constant 0 : index
    %c0_1 = arith.constant 0 : index
    %3 = vector.load %arg26[%c0, %c0_1] : memref<8x32xf32, #tpu.memory_space<vmem>>, vector<8x32xf32>
    %c0_2 = arith.constant 0 : index
    %c0_3 = arith.constant 0 : index
    %4 = vector.load %arg27[%c0_2, %c0_3] : memref<8x32xf32, #tpu.memory_space<vmem>>, vector<8x32xf32>
    %c0_4 = arith.constant 0 : index
    %c0_5 = arith.constant 0 : index
    %5 = vector.load %arg4[%c0_4, %c0_5] : memref<32x8xf32, #tpu.memory_space<vmem>>, vector<32x8xf32>
    %cst = arith.constant dense<0.000000e+00> : vector<8x8xf32>
    %6 = tpu.matmul %3, %5, %cst {dimension_numbers = #tpu.dot_dimension_numbers<[1], [0], [0], [1], [0, 0, 1, 1], [], []>} : vector<8x32xf32>, vector<32x8xf32>, vector<8x8xf32> -> vector<8x8xf32>
    %c0_6 = arith.constant 0 : index
    %c0_7 = arith.constant 0 : index
    %7 = vector.load %arg5[%c0_6, %c0_7] : memref<32x8xf32, #tpu.memory_space<vmem>>, vector<32x8xf32>
    %cst_8 = arith.constant dense<0.000000e+00> : vector<8x8xf32>
    %8 = tpu.matmul %4, %7, %cst_8 {dimension_numbers = #tpu.dot_dimension_numbers<[1], [0], [0], [1], [0, 0, 1, 1], [], []>} : vector<8x32xf32>, vector<32x8xf32>, vector<8x8xf32> -> vector<8x8xf32>
    %9 = arith.addf %6, %8 : vector<8x8xf32>
    %c0_9 = arith.constant 0 : index
    %c0_10 = arith.constant 0 : index
    %10 = vector.load %arg6[%c0_9, %c0_10] : memref<1x8xf32, #tpu.memory_space<vmem>>, vector<1x8xf32>
    %11 = vector.broadcast %10 : vector<1x8xf32> to vector<8x8xf32>
    %12 = arith.addf %9, %11 : vector<8x8xf32>
    %cst_11 = arith.constant dense<0xFF800000> : vector<8xf32>
    %13 = vector.multi_reduction <maximumf>, %12, %cst_11 [1] : vector<8x8xf32> to vector<8xf32>
    %14 = vector.shape_cast %13 : vector<8xf32> to vector<8x1xf32>
    %15 = vector.broadcast %14 : vector<8x1xf32> to vector<8x8xf32>
    %16 = arith.subf %12, %15 : vector<8x8xf32>
    %17 = math.exp %16 : vector<8x8xf32>
    %cst_12 = arith.constant dense<0.000000e+00> : vector<8xf32>
    %18 = vector.multi_reduction <add>, %17, %cst_12 [1] : vector<8x8xf32> to vector<8xf32>
    %19 = vector.shape_cast %18 : vector<8xf32> to vector<8x1xf32>
    %20 = tpu.reciprocal %19 : vector<8x1xf32> -> vector<8x1xf32>
    %21 = vector.broadcast %20 : vector<8x1xf32> to vector<8x8xf32>
    %22 = arith.mulf %17, %21 : vector<8x8xf32>
    %23 = vector.shape_cast %22 : vector<8x8xf32> to vector<8x8x1xf32>
    %c0_13 = arith.constant 0 : index
    %c0_14 = arith.constant 0 : index
    %c0_15 = arith.constant 0 : index
    %24 = vector.load %arg1[%c0_13, %c0_14, %c0_15] : memref<8x8x32xf32, #tpu.memory_space<vmem>>, vector<8x8x32xf32>
    %25 = vector.broadcast %23 : vector<8x8x1xf32> to vector<8x8x32xf32>
    %26 = arith.mulf %25, %24 : vector<8x8x32xf32>
    %cst_16 = arith.constant dense<0.000000e+00> : vector<8x32xf32>
    %27 = vector.multi_reduction <add>, %26, %cst_16 [1] : vector<8x8x32xf32> to vector<8x32xf32>
    %c0_17 = arith.constant 0 : index
    %c0_18 = arith.constant 0 : index
    %28 = vector.load %arg7[%c0_17, %c0_18] : memref<32x16xf32, #tpu.memory_space<vmem>>, vector<32x16xf32>
    %cst_19 = arith.constant dense<0.000000e+00> : vector<8x16xf32>
    %29 = tpu.matmul %3, %28, %cst_19 {dimension_numbers = #tpu.dot_dimension_numbers<[1], [0], [0], [1], [0, 0, 1, 1], [], []>} : vector<8x32xf32>, vector<32x16xf32>, vector<8x16xf32> -> vector<8x16xf32>
    %c0_20 = arith.constant 0 : index
    %c0_21 = arith.constant 0 : index
    %30 = vector.load %arg8[%c0_20, %c0_21] : memref<32x16xf32, #tpu.memory_space<vmem>>, vector<32x16xf32>
    %cst_22 = arith.constant dense<0.000000e+00> : vector<8x16xf32>
    %31 = tpu.matmul %27, %30, %cst_22 {dimension_numbers = #tpu.dot_dimension_numbers<[1], [0], [0], [1], [0, 0, 1, 1], [], []>} : vector<8x32xf32>, vector<32x16xf32>, vector<8x16xf32> -> vector<8x16xf32>
    %32 = arith.addf %29, %31 : vector<8x16xf32>
    %c0_23 = arith.constant 0 : index
    %c0_24 = arith.constant 0 : index
    %33 = vector.load %arg9[%c0_23, %c0_24] : memref<1x16xf32, #tpu.memory_space<vmem>>, vector<1x16xf32>
    %34 = vector.broadcast %33 : vector<1x16xf32> to vector<8x16xf32>
    %35 = arith.addf %32, %34 : vector<8x16xf32>
    %cst_25 = arith.constant 0.000000e+00 : f32
    %36 = vector.broadcast %cst_25 : f32 to vector<8x16xf32>
    %37 = arith.maximumf %35, %36 : vector<8x16xf32>
    %c0_26 = arith.constant 0 : index
    %c0_27 = arith.constant 0 : index
    %38 = vector.load %arg10[%c0_26, %c0_27] : memref<16x32xf32, #tpu.memory_space<vmem>>, vector<16x32xf32>
    %cst_28 = arith.constant dense<0.000000e+00> : vector<8x32xf32>
    %39 = tpu.matmul %37, %38, %cst_28 {dimension_numbers = #tpu.dot_dimension_numbers<[1], [0], [0], [1], [0, 0, 1, 1], [], []>} : vector<8x16xf32>, vector<16x32xf32>, vector<8x32xf32> -> vector<8x32xf32>
    %c0_29 = arith.constant 0 : index
    %c0_30 = arith.constant 0 : index
    %40 = vector.load %arg13[%c0_29, %c0_30] : memref<32x32xf32, #tpu.memory_space<vmem>>, vector<32x32xf32>
    %cst_31 = arith.constant dense<0.000000e+00> : vector<8x32xf32>
    %41 = tpu.matmul %4, %40, %cst_31 {dimension_numbers = #tpu.dot_dimension_numbers<[1], [0], [0], [1], [0, 0, 1, 1], [], []>} : vector<8x32xf32>, vector<32x32xf32>, vector<8x32xf32> -> vector<8x32xf32>
    %42 = arith.addf %39, %41 : vector<8x32xf32>
    %c0_32 = arith.constant 0 : index
    %c0_33 = arith.constant 0 : index
    %43 = vector.load %arg16[%c0_32, %c0_33] : memref<1x32xf32, #tpu.memory_space<vmem>>, vector<1x32xf32>
    %44 = vector.broadcast %43 : vector<1x32xf32> to vector<8x32xf32>
    %45 = arith.addf %42, %44 : vector<8x32xf32>
    %46 = arith.negf %45 : vector<8x32xf32>
    %47 = math.exp %46 : vector<8x32xf32>
    %cst_34 = arith.constant 1.000000e+00 : f32
    %48 = vector.broadcast %cst_34 : f32 to vector<8x32xf32>
    %49 = arith.addf %48, %47 : vector<8x32xf32>
    %50 = arith.divf %48, %49 : vector<8x32xf32>
    %c0_35 = arith.constant 0 : index
    %c0_36 = arith.constant 0 : index
    %51 = vector.load %arg11[%c0_35, %c0_36] : memref<16x32xf32, #tpu.memory_space<vmem>>, vector<16x32xf32>
    %cst_37 = arith.constant dense<0.000000e+00> : vector<8x32xf32>
    %52 = tpu.matmul %37, %51, %cst_37 {dimension_numbers = #tpu.dot_dimension_numbers<[1], [0], [0], [1], [0, 0, 1, 1], [], []>} : vector<8x16xf32>, vector<16x32xf32>, vector<8x32xf32> -> vector<8x32xf32>
    %c0_38 = arith.constant 0 : index
    %c0_39 = arith.constant 0 : index
    %53 = vector.load %arg14[%c0_38, %c0_39] : memref<32x32xf32, #tpu.memory_space<vmem>>, vector<32x32xf32>
    %cst_40 = arith.constant dense<0.000000e+00> : vector<8x32xf32>
    %54 = tpu.matmul %4, %53, %cst_40 {dimension_numbers = #tpu.dot_dimension_numbers<[1], [0], [0], [1], [0, 0, 1, 1], [], []>} : vector<8x32xf32>, vector<32x32xf32>, vector<8x32xf32> -> vector<8x32xf32>
    %55 = arith.addf %52, %54 : vector<8x32xf32>
    %c0_41 = arith.constant 0 : index
    %c0_42 = arith.constant 0 : index
    %56 = vector.load %arg17[%c0_41, %c0_42] : memref<1x32xf32, #tpu.memory_space<vmem>>, vector<1x32xf32>
    %57 = vector.broadcast %56 : vector<1x32xf32> to vector<8x32xf32>
    %58 = arith.addf %55, %57 : vector<8x32xf32>
    %59 = arith.negf %58 : vector<8x32xf32>
    %60 = math.exp %59 : vector<8x32xf32>
    %cst_43 = arith.constant 1.000000e+00 : f32
    %61 = vector.broadcast %cst_43 : f32 to vector<8x32xf32>
    %62 = arith.addf %61, %60 : vector<8x32xf32>
    %63 = arith.divf %61, %62 : vector<8x32xf32>
    %c0_44 = arith.constant 0 : index
    %c0_45 = arith.constant 0 : index
    %64 = vector.load %arg12[%c0_44, %c0_45] : memref<16x32xf32, #tpu.memory_space<vmem>>, vector<16x32xf32>
    %cst_46 = arith.constant dense<0.000000e+00> : vector<8x32xf32>
    %65 = tpu.matmul %37, %64, %cst_46 {dimension_numbers = #tpu.dot_dimension_numbers<[1], [0], [0], [1], [0, 0, 1, 1], [], []>} : vector<8x16xf32>, vector<16x32xf32>, vector<8x32xf32> -> vector<8x32xf32>
    %c0_47 = arith.constant 0 : index
    %c0_48 = arith.constant 0 : index
    %66 = vector.load %arg18[%c0_47, %c0_48] : memref<1x32xf32, #tpu.memory_space<vmem>>, vector<1x32xf32>
    %67 = vector.broadcast %66 : vector<1x32xf32> to vector<8x32xf32>
    %68 = arith.addf %65, %67 : vector<8x32xf32>
    %c0_49 = arith.constant 0 : index
    %c0_50 = arith.constant 0 : index
    %69 = vector.load %arg15[%c0_49, %c0_50] : memref<32x32xf32, #tpu.memory_space<vmem>>, vector<32x32xf32>
    %cst_51 = arith.constant dense<0.000000e+00> : vector<8x32xf32>
    %70 = tpu.matmul %4, %69, %cst_51 {dimension_numbers = #tpu.dot_dimension_numbers<[1], [0], [0], [1], [0, 0, 1, 1], [], []>} : vector<8x32xf32>, vector<32x32xf32>, vector<8x32xf32> -> vector<8x32xf32>
    %c0_52 = arith.constant 0 : index
    %c0_53 = arith.constant 0 : index
    %71 = vector.load %arg19[%c0_52, %c0_53] : memref<1x32xf32, #tpu.memory_space<vmem>>, vector<1x32xf32>
    %72 = vector.broadcast %71 : vector<1x32xf32> to vector<8x32xf32>
    %73 = arith.addf %70, %72 : vector<8x32xf32>
    %74 = arith.mulf %50, %73 : vector<8x32xf32>
    %75 = arith.addf %68, %74 : vector<8x32xf32>
    %76 = math.tanh %75 : vector<8x32xf32>
    %cst_54 = arith.constant 1.000000e+00 : f32
    %77 = vector.broadcast %cst_54 : f32 to vector<8x32xf32>
    %78 = arith.subf %77, %63 : vector<8x32xf32>
    %79 = arith.mulf %78, %76 : vector<8x32xf32>
    %80 = arith.mulf %63, %4 : vector<8x32xf32>
    %81 = arith.addf %79, %80 : vector<8x32xf32>
    %c0_55 = arith.constant 0 : index
    %c0_56 = arith.constant 0 : index
    %82 = vector.load %arg20[%c0_55, %c0_56] : memref<32x128xf32, #tpu.memory_space<vmem>>, vector<32x128xf32>
    %cst_57 = arith.constant dense<0.000000e+00> : vector<8x128xf32>
    %83 = tpu.matmul %81, %82, %cst_57 {dimension_numbers = #tpu.dot_dimension_numbers<[1], [0], [0], [1], [0, 0, 1, 1], [], []>} : vector<8x32xf32>, vector<32x128xf32>, vector<8x128xf32> -> vector<8x128xf32>
    %c0_58 = arith.constant 0 : index
    %c0_59 = arith.constant 0 : index
    %84 = vector.load %arg21[%c0_58, %c0_59] : memref<1x128xf32, #tpu.memory_space<vmem>>, vector<1x128xf32>
    %85 = vector.broadcast %84 : vector<1x128xf32> to vector<8x128xf32>
    %86 = arith.addf %83, %85 : vector<8x128xf32>
    %cst_60 = arith.constant dense<0xFF800000> : vector<8xf32>
    %87 = vector.multi_reduction <maximumf>, %86, %cst_60 [1] : vector<8x128xf32> to vector<8xf32>
    %88 = vector.shape_cast %87 : vector<8xf32> to vector<8x1xf32>
    %89 = vector.broadcast %88 : vector<8x1xf32> to vector<8x128xf32>
    %90 = arith.subf %86, %89 : vector<8x128xf32>
    %91 = math.exp %90 : vector<8x128xf32>
    %cst_61 = arith.constant dense<0.000000e+00> : vector<8xf32>
    %92 = vector.multi_reduction <add>, %91, %cst_61 [1] : vector<8x128xf32> to vector<8xf32>
    %93 = vector.shape_cast %92 : vector<8xf32> to vector<8x1xf32>
    %94 = math.log %93 : vector<8x1xf32>
    %95 = vector.broadcast %94 : vector<8x1xf32> to vector<8x128xf32>
    %96 = arith.subf %90, %95 : vector<8x128xf32>
    %97 = tpu.iota {dimensions = array<i32: 1>} : vector<8x128xi32>
    %cst_62 = arith.constant dense<0xFF800000> : vector<8xf32>
    %98 = vector.multi_reduction <maximumf>, %96, %cst_62 [1] : vector<8x128xf32> to vector<8xf32>
    %99 = vector.shape_cast %98 : vector<8xf32> to vector<8x1xf32>
    %100 = vector.broadcast %99 : vector<8x1xf32> to vector<8x128xf32>
    %101 = arith.cmpf oeq, %96, %100 : vector<8x128xf32>
    %c128_i32 = arith.constant 128 : i32
    %102 = vector.broadcast %c128_i32 : i32 to vector<8x128xi32>
    %103 = arith.select %101, %97, %102 : vector<8x128xi1>, vector<8x128xi32>
    %cst_63 = arith.constant dense<2147483647> : vector<8xi32>
    %104 = vector.multi_reduction <minsi>, %103, %cst_63 [1] : vector<8x128xi32> to vector<8xi32>
    %105 = vector.shape_cast %104 : vector<8xi32> to vector<8x1xi32>
    %106 = vector.broadcast %105 : vector<8x1xi32> to vector<8x128xi32>
    %107 = arith.cmpi eq, %97, %106 : vector<8x128xi32>
    %108 = arith.extui %107 : vector<8x128xi1> to vector<8x128xi32>
    %109 = arith.sitofp %108 : vector<8x128xi32> to vector<8x128xf32>
    %c0_64 = arith.constant 0 : index
    %c0_65 = arith.constant 0 : index
    %110 = vector.load %arg22[%c0_64, %c0_65] : memref<128x32xf32, #tpu.memory_space<vmem>>, vector<128x32xf32>
    %cst_66 = arith.constant dense<0.000000e+00> : vector<8x32xf32>
    %111 = tpu.matmul %109, %110, %cst_66 {dimension_numbers = #tpu.dot_dimension_numbers<[1], [0], [0], [1], [0, 0, 1, 1], [], []>} : vector<8x128xf32>, vector<128x32xf32>, vector<8x32xf32> -> vector<8x32xf32>
    %c0_67 = arith.constant 0 : index
    %c0_68 = arith.constant 0 : index
    %c0_69 = arith.constant 0 : index
    %112 = vector.load %arg23[%c0_67, %c0_68, %c0_69] : memref<1x8x128xf32, #tpu.memory_space<vmem>>, vector<1x8x128xf32>
    %113 = vector.shape_cast %112 : vector<1x8x128xf32> to vector<8x128xf32>
    %114 = vector.shape_cast %96 : vector<8x128xf32> to vector<1x8x128xf32>
    tpu.vector_store %arg23[%c0_67, %c0_68, %c0_69], %114 {strides = array<i32>} : memref<1x8x128xf32, #tpu.memory_space<vmem>>, vector<1x8x128xf32>,
    %c0_70 = arith.constant 0 : index
    %c0_71 = arith.constant 0 : index
    %115 = vector.load %arg26[%c0_70, %c0_71] : memref<8x32xf32, #tpu.memory_space<vmem>>, vector<8x32xf32>
    tpu.vector_store %arg26[%c0_70, %c0_71], %111 {strides = array<i32>} : memref<8x32xf32, #tpu.memory_space<vmem>>, vector<8x32xf32>,
    %c0_72 = arith.constant 0 : index
    %c0_73 = arith.constant 0 : index
    %116 = vector.load %arg27[%c0_72, %c0_73] : memref<8x32xf32, #tpu.memory_space<vmem>>, vector<8x32xf32>
    tpu.vector_store %arg27[%c0_72, %c0_73], %81 {strides = array<i32>} : memref<8x32xf32, #tpu.memory_space<vmem>>, vector<8x32xf32>,
    %c0_74 = arith.constant 0 : index
    %c0_75 = arith.constant 0 : index
    %117 = vector.load %arg24[%c0_74, %c0_75] : memref<8x32xf32, #tpu.memory_space<vmem>>, vector<8x32xf32>
    tpu.vector_store %arg24[%c0_74, %c0_75], %111 {strides = array<i32>} : memref<8x32xf32, #tpu.memory_space<vmem>>, vector<8x32xf32>,
    %c0_76 = arith.constant 0 : index
    %c0_77 = arith.constant 0 : index
    %118 = vector.load %arg25[%c0_76, %c0_77] : memref<8x32xf32, #tpu.memory_space<vmem>>, vector<8x32xf32>
    tpu.vector_store %arg25[%c0_76, %c0_77], %81 {strides = array<i32>} : memref<8x32xf32, #tpu.memory_space<vmem>>, vector<8x32xf32>,
    return
  }
  func.func @transform_0(%arg0: i32) -> (i32, i32, i32) {
    %c0_i32 = arith.constant 0 : i32
    %c0_i32_0 = arith.constant 0 : i32
    %c0_i32_1 = arith.constant 0 : i32
    %c0_i32_2 = arith.constant 0 : i32
    return %c0_i32, %c0_i32_0, %c0_i32_1 : i32, i32, i32
  }
  func.func @transform_1(%arg0: i32) -> (i32, i32) {
    %c0_i32 = arith.constant 0 : i32
    %c0_i32_0 = arith.constant 0 : i32
    %c0_i32_1 = arith.constant 0 : i32
    return %c0_i32, %c0_i32_0 : i32, i32
  }
  func.func @transform_2(%arg0: i32) -> (i32, i32) {
    %c0_i32 = arith.constant 0 : i32
    %c0_i32_0 = arith.constant 0 : i32
    %c0_i32_1 = arith.constant 0 : i32
    return %c0_i32, %c0_i32_0 : i32, i32
  }
  func.func @transform_3(%arg0: i32) -> (i32, i32) {
    %c0_i32 = arith.constant 0 : i32
    %c0_i32_0 = arith.constant 0 : i32
    %c0_i32_1 = arith.constant 0 : i32
    return %c0_i32, %c0_i32_0 : i32, i32
  }
  func.func @transform_4(%arg0: i32) -> (i32, i32) {
    %c0_i32 = arith.constant 0 : i32
    %c0_i32_0 = arith.constant 0 : i32
    %c0_i32_1 = arith.constant 0 : i32
    return %c0_i32, %c0_i32_0 : i32, i32
  }
  func.func @transform_5(%arg0: i32) -> (i32, i32) {
    %c0_i32 = arith.constant 0 : i32
    %c0_i32_0 = arith.constant 0 : i32
    %c0_i32_1 = arith.constant 0 : i32
    return %c0_i32, %c0_i32_0 : i32, i32
  }
  func.func @transform_6(%arg0: i32) -> (i32, i32) {
    %c0_i32 = arith.constant 0 : i32
    %c0_i32_0 = arith.constant 0 : i32
    %c0_i32_1 = arith.constant 0 : i32
    return %c0_i32, %c0_i32_0 : i32, i32
  }
  func.func @transform_7(%arg0: i32) -> (i32, i32) {
    %c0_i32 = arith.constant 0 : i32
    %c0_i32_0 = arith.constant 0 : i32
    %c0_i32_1 = arith.constant 0 : i32
    return %c0_i32, %c0_i32_0 : i32, i32
  }
  func.func @transform_8(%arg0: i32) -> (i32, i32) {
    %c0_i32 = arith.constant 0 : i32
    %c0_i32_0 = arith.constant 0 : i32
    %c0_i32_1 = arith.constant 0 : i32
    return %c0_i32, %c0_i32_0 : i32, i32
  }
  func.func @transform_9(%arg0: i32) -> (i32, i32) {
    %c0_i32 = arith.constant 0 : i32
    %c0_i32_0 = arith.constant 0 : i32
    %c0_i32_1 = arith.constant 0 : i32
    return %c0_i32, %c0_i32_0 : i32, i32
  }
  func.func @transform_10(%arg0: i32) -> (i32, i32) {
    %c0_i32 = arith.constant 0 : i32
    %c0_i32_0 = arith.constant 0 : i32
    %c0_i32_1 = arith.constant 0 : i32
    return %c0_i32, %c0_i32_0 : i32, i32
  }
  func.func @transform_11(%arg0: i32) -> (i32, i32) {
    %c0_i32 = arith.constant 0 : i32
    %c0_i32_0 = arith.constant 0 : i32
    %c0_i32_1 = arith.constant 0 : i32
    return %c0_i32, %c0_i32_0 : i32, i32
  }
  func.func @transform_12(%arg0: i32) -> (i32, i32) {
    %c0_i32 = arith.constant 0 : i32
    %c0_i32_0 = arith.constant 0 : i32
    %c0_i32_1 = arith.constant 0 : i32
    return %c0_i32, %c0_i32_0 : i32, i32
  }
  func.func @transform_13(%arg0: i32) -> (i32, i32) {
    %c0_i32 = arith.constant 0 : i32
    %c0_i32_0 = arith.constant 0 : i32
    %c0_i32_1 = arith.constant 0 : i32
    return %c0_i32, %c0_i32_0 : i32, i32
  }
  func.func @transform_14(%arg0: i32) -> (i32, i32) {
    %c0_i32 = arith.constant 0 : i32
    %c0_i32_0 = arith.constant 0 : i32
    %c0_i32_1 = arith.constant 0 : i32
    return %c0_i32, %c0_i32_0 : i32, i32
  }
  func.func @transform_15(%arg0: i32) -> (i32, i32) {
    %c0_i32 = arith.constant 0 : i32
    %c0_i32_0 = arith.constant 0 : i32
    %c0_i32_1 = arith.constant 0 : i32
    return %c0_i32, %c0_i32_0 : i32, i32
  }
  func.func @transform_16(%arg0: i32) -> (i32, i32) {
    %c0_i32 = arith.constant 0 : i32
    %c0_i32_0 = arith.constant 0 : i32
    %c0_i32_1 = arith.constant 0 : i32
    return %c0_i32, %c0_i32_0 : i32, i32
  }
  func.func @transform_17(%arg0: i32) -> (i32, i32) {
    %c0_i32 = arith.constant 0 : i32
    %c0_i32_0 = arith.constant 0 : i32
    %c0_i32_1 = arith.constant 0 : i32
    return %c0_i32, %c0_i32_0 : i32, i32
  }
  func.func @transform_18(%arg0: i32) -> (i32, i32) {
    %c0_i32 = arith.constant 0 : i32
    %c0_i32_0 = arith.constant 0 : i32
    %c0_i32_1 = arith.constant 0 : i32
    return %c0_i32, %c0_i32_0 : i32, i32
  }
  func.func @transform_19(%arg0: i32) -> (i32, i32) {
    %c0_i32 = arith.constant 0 : i32
    %c0_i32_0 = arith.constant 0 : i32
    %c0_i32_1 = arith.constant 0 : i32
    return %c0_i32, %c0_i32_0 : i32, i32
  }
  func.func @transform_20(%arg0: i32) -> (i32, i32) {
    %c0_i32 = arith.constant 0 : i32
    %c0_i32_0 = arith.constant 0 : i32
    %c0_i32_1 = arith.constant 0 : i32
    return %c0_i32, %c0_i32_0 : i32, i32
  }
  func.func @transform_21(%arg0: i32) -> (i32, i32) {
    %c0_i32 = arith.constant 0 : i32
    %c0_i32_0 = arith.constant 0 : i32
    %c0_i32_1 = arith.constant 0 : i32
    return %c0_i32, %c0_i32_0 : i32, i32
  }
  func.func @transform_22(%arg0: i32) -> (i32, i32, i32) {
    %c0_i32 = arith.constant 0 : i32
    %c0_i32_0 = arith.constant 0 : i32
    %c0_i32_1 = arith.constant 0 : i32
    return %arg0, %c0_i32, %c0_i32_0 : i32, i32, i32
  }
  func.func @transform_23(%arg0: i32) -> (i32, i32) {
    %c0_i32 = arith.constant 0 : i32
    %c0_i32_0 = arith.constant 0 : i32
    %c0_i32_1 = arith.constant 0 : i32
    return %c0_i32, %c0_i32_0 : i32, i32
  }
  func.func @transform_24(%arg0: i32) -> (i32, i32) {
    %c0_i32 = arith.constant 0 : i32
    %c0_i32_0 = arith.constant 0 : i32
    %c0_i32_1 = arith.constant 0 : i32
    return %c0_i32, %c0_i32_0 : i32, i32
  }
}

</mosaic_0001>

<bundles_post_ra>
// kernel: tpu_custom_call.1
= control target key start
LH: loop header
LB: loop body
LE: loop exit
PB: predicated region body
PF: predicated region fallthrough
CT: control target
= control target key end

     0   :  { %s2196_s0 = inlined_call_operand.vmem [shape: f32[8,8,32], index: 0, kind: input, shape index: {}]   ;;  %s2197_s1 = inlined_call_operand.vmem [shape: f32[8,32], index: 1, kind: input, shape index: {}]   ;;  %s2198_s2 = inlined_call_operand.vmem [shape: f32[8,32], index: 2, kind: input, shape index: {}]   ;;  %s2199_s3 = inlined_call_operand.vmem [shape: f32[32,8], index: 3, kind: input, shape index: {}]   ;;  %s2200_s4 = inlined_call_operand.vmem [shape: f32[32,8], index: 4, kind: input, shape index: {}]   ;;  %s2201_s5 = inlined_call_operand.vmem [shape: f32[1,8], index: 5, kind: input, shape index: {}]   ;;  %s2202_s6 = inlined_call_operand.vmem [shape: f32[32,16], index: 6, kind: input, shape index: {}]   ;;  %s2203_s7 = inlined_call_operand.vmem [shape: f32[32,16], index: 7, kind: input, shape index: {}]   ;;  %s2204_s8 = inlined_call_operand.vmem [shape: f32[1,16], index: 8, kind: input, shape index: {}]   ;;  %s2205_s9 = inlined_call_operand.vmem [shape: f32[16,32], index: 9, kind: input, shape index: {}]   ;;  %s2206_s10 = inlined_call_operand.vmem [shape: f32[16,32], index: 10, kind: input, shape index: {}]   ;;  %s2207_s11 = inlined_call_operand.vmem [shape: f32[16,32], index: 11, kind: input, shape index: {}]   ;;  %s2208_s12 = inlined_call_operand.vmem [shape: f32[32,32], index: 12, kind: input, shape index: {}]   ;;  %s2209_s13 = inlined_call_operand.vmem [shape: f32[32,32], index: 13, kind: input, shape index: {}]   ;;  %s2210_s14 = inlined_call_operand.vmem [shape: f32[32,32], index: 14, kind: input, shape index: {}]   ;;  %s2211_s15 = inlined_call_operand.vmem [shape: f32[1,32], index: 15, kind: input, shape index: {}]   ;;  %s2212_s16 = inlined_call_operand.vmem [shape: f32[1,32], index: 16, kind: input, shape index: {}]   ;;  %s2213_s17 = inlined_call_operand.vmem [shape: f32[1,32], index: 17, kind: input, shape index: {}]   ;;  %s2214_s18 = inlined_call_operand.vmem [shape: f32[1,32], index: 18, kind: input, shape index: {}]   ;;  %s2215_s19 = inlined_call_operand.vmem [shape: f32[32,128], index: 19, kind: input, shape index: {}]   ;;  %s2216_s20 = inlined_call_operand.vmem [shape: f32[1,128], index: 20, kind: input, shape index: {}]   ;;  %s2217_s21 = inlined_call_operand.vmem [shape: f32[128,32], index: 21, kind: input, shape index: {}]   ;;  %s2218_s22 = inlined_call_operand.hbm [shape: f32[1,8,128], index: 22, kind: output, shape index: {0}]   ;;  %s2219_s23 = inlined_call_operand.hbm [shape: f32[8,32], index: 23, kind: output, shape index: {1}]   ;;  %s2220_s24 = inlined_call_operand.hbm [shape: f32[8,32], index: 24, kind: output, shape index: {2}]  }
   0x1   :  { %2226 = sst [smem:[#allocation11_spill]] %s2196_s0 }
   0x2   :  { %2227 = sst [smem:[#allocation12_spill]] %s2197_s1 }
   0x3   :  { %2228 = sst [smem:[#allocation13_spill]] %s2198_s2 }
   0x4   :  { %2229 = sst [smem:[#allocation14_spill]] %s2199_s3 }
   0x5   :  { %2230 = sst [smem:[#allocation15_spill]] %s2200_s4 }
   0x6   :  { %2231 = sst [smem:[#allocation16_spill]] %s2201_s5 }
   0x7   :  { %2232 = sst [smem:[#allocation17_spill]] %s2202_s6 }
   0x8   :  { %2233 = sst [smem:[#allocation18_spill]] %s2203_s7 }
   0x9   :  { %2234 = sst [smem:[#allocation19_spill]] %s2204_s8 }
   0xa   :  { %30 = vsyncpa [#allocation5], 0  ;;  %s2235_s27 = sld [smem:[#allocation15_spill]]  ;;  %v1719_v3 = vmov 0.0|0.0   ;;  %vm1720_vm0 = vmmov 0   ;;  %v1721_v6 = vmov 0.0  }
   0xb   :  { %1543 = vmatprep.subr.bf16.mxu0 %v1719_v3  ;;  %1407 = vmatprep.mubr.msk.f32.mxu0 %vm1720_vm0, %v1721_v6  ;;  %vm81_vm1 = vcmask 261120   ;;  %s2236_s25 = sld [smem:[#allocation13_spill]]  ;;  %s2237_s1 = sld [smem:[#allocation12_spill]] }
   0xc   :  { %1573 = vmatprep.subr.bf16.mxu1 %v1719_v3  ;;  %1458 = vmatprep.mubr.msk.f32.mxu1 %vm1720_vm0, %v1721_v6 }
  0x10   :  { %v91_v0 = vld [vmem:[%s2235_s27] sm:$0xff]  ;;  %v92_v1 = vld [vmem:[%s2235_s27 + $0x8] sm:$0xff]  ;;  %v93_v2 = vld [vmem:[%s2235_s27 + $0x10] sm:$0xff] }
  0x11   :  { %v1544_v4 = vpack.c.bf16 %v92_v1, %v91_v0  ;;  %v94_v5 = vld [vmem:[%s2235_s27 + $0x18] sm:$0xff]  ;;  %v83_v7 = vld [vmem:[%s2236_s25] sm:$0xff] }
  0x12   :  { %84 = vst.msk [vmem:[#allocation3] sm:$0xff] %vm81_vm1, %v83_v7  ;;  %v1547_v8 = vpack.c.bf16 %v94_v5, %v93_v2  ;;  %v80_v9 = vld [vmem:[%s2237_s1] sm:$0xff] }
  0x13   :  { %1545 = vmatpush3.bf16.msra.mxu0 %v1544_v4 }
  0x14   :  { %31 = vsyncpa [#allocation7], 0  ;;  %1546 = vmatprep.subr.bf16.mxu0 %v1719_v3  ;;  %s2238_s27 = sld [smem:[#allocation14_spill]]  ;;  %82 = vst.msk [vmem:[#allocation2] sm:$0xff] %vm81_vm1, %v80_v9  ;;  %s2239_s25 = sld [smem:[#allocation16_spill]]  ;;  %vm250_vm2 = vcmask 64512   ;;  %v262_v32 = vlaneseq }
  0x15   :  { %s2240_s1 = sld [smem:[#allocation18_spill]]  ;;  %s2241_s7 = sld [smem:[#allocation11_spill]]  ;;  %vm406_vm3 = vcmask 1041409   ;;  %vm408_vm4 = vcmask 1042434   ;;  %vm410_vm5 = vcmask 1043459   ;;  %vm412_vm6 = vcmask 1044484  }
  0x16   :  { %v263_v33 = vshrl.u32 %v262_v32, 7  ;;  %vm414_vm7 = vcmask 1045509   ;;  %s2242_s3 = sld [smem:[#allocation17_spill]]  ;;  %vm416_vm8 = vcmask 1046534   ;;  %vm418_vm9 = vcmask 1047559   ;;  %s2243_s28 = sld [smem:[#allocation19_spill]] }
  0x17   :  { %1548 = vmatpush3.bf16.msra.mxu0 %v1547_v8  ;;  %vm647_vm10 = vcmask 130048  }
  0x18   :  { %1549 = vmatprep.subr.bf16.mxu0 %v1719_v3  ;;  %v278_v34 = vsub.s32 2, %v263_v33  ;;  %v264_v35 = vsub.s32 0, %v263_v33  ;;  %v271_v40 = vsub.s32 1, %v263_v33  ;;  %v285_v42 = vsub.s32 3, %v263_v33 }
  0x19   :  { %v1891_v15 = vld [vmem:[#allocation3] sm:$0xff]  ;;  %v292_v44 = vsub.s32 4, %v263_v33  ;;  %v299_v46 = vsub.s32 5, %v263_v33  ;;  %v306_v48 = vsub.s32 6, %v263_v33  ;;  %v313_v52 = vsub.s32 7, %v263_v33 }
  0x1a   :  { %v87_v10 = vld [vmem:[%s2238_s27] sm:$0xff]  ;;  %v88_v11 = vld [vmem:[%s2238_s27 + $0x8] sm:$0xff]  ;;  %v89_v13 = vld [vmem:[%s2238_s27 + $0x10] sm:$0xff]  ;;  %1408 = vmatmul.mubr.msk.f32.vlgmr.msra.gmra.mrb[0].mxu0 %vm81_vm1, %v1891_v15 }
  0x1b   :  { %v1550_v12 = vpack.c.bf16 %v88_v11, %v87_v10  ;;  %v90_v14 = vld [vmem:[%s2238_s27 + $0x18] sm:$0xff]  ;;  %1418 = vmatprep.mubr.msk.f32.mxu0 %vm1720_vm0, %v1721_v6  ;;  %v1898_v17 = vld [vmem:[#allocation2] sm:$0xff]  ;;  %v395_v50 = vld [vmem:[%s2240_s1 + $0x8] sm:$0xff] }
  0x1c   :  { %v1553_v16 = vpack.c.bf16 %v90_v14, %v89_v13  ;;  %v1313_v21 = vld [vmem:[%s2239_s25] ss:$0 sm:$0xff]  ;;  %v396_v54 = vld [vmem:[%s2240_s1 + $0x10] sm:$0xff]  ;;  %v397_v55 = vld [vmem:[%s2240_s1 + $0x18] sm:$0xff] }
  0x1d   :  { %1551 = vmatpush3.bf16.msra.mxu0 %v1550_v12  ;;  %v394_v49 = vld [vmem:[%s2240_s1] sm:$0xff]  ;;  %v1559_v57 = vpack.c.bf16 %v397_v55, %v396_v54  ;;  %v319_v60 = vld [vmem:[%s2241_s7 + $0x8] sm:$0xff]  ;;  %v320_v61 = vld [vmem:[%s2241_s7 + $0x10] sm:$0xff] }
  0x1e   :  { %1552 = vmatprep.subr.bf16.mxu0 %v1719_v3  ;;  %v1556_v53 = vpack.c.bf16 %v395_v50, %v394_v49  ;;  %v318_v58 = vld [vmem:[%s2241_s7] sm:$0xff]  ;;  %v321_v4 = vld [vmem:[%s2241_s7 + $0x18] sm:$0xff] }
  0x1f   :  { %v322_v13 = vld [vmem:[%s2241_s7 + $0x20] sm:$0xff] }
  0x21   :  { %1554 = vmatpush3.bf16.msra.mxu0 %v1553_v16 }
  0x22   :  { %1555 = vmatprep.subr.bf16.mxu0 %v1719_v3 }
  0x24   :  { %1419 = vmatmul.mubr.msk.f32.vlgmr.msra.gmra.mrb[2].mxu0 %vm81_vm1, %v1898_v17 }
  0x25   :  { %1429 = vmatprep.mubr.msk.f32.mxu0 %vm1720_vm0, %v1721_v6  ;;  %1557 = vmatpush3.bf16.msra.mxu0 %v1556_v53 }
  0x26   :  { %1558 = vmatprep.subr.bf16.mxu0 %v1719_v3 }
  0x29   :  { %1560 = vmatpush3.bf16.msra.mxu0 %v1559_v57 }
  0x2a   :  { %1561 = vmatprep.subr.bf16.mxu0 %v1719_v3 }
  0xed   :  { %v165_v18 = vpop.f32.mrb[0].mxu0 }
  0xee   :  { %v1409_v19 = vpop.f32.mrb[1].mxu0 }
  0xf7   :  { %v238_v20 = vpop.f32.mrb[2].mxu0 }
  0xf8   :  { %v239_v22 = vadd.f32 %v238_v20, %v165_v18  ;;  %v1420_v23 = vpop.f32.mrb[3].mxu0 }
  0xf9   :  { %v323_v23 = vld [vmem:[%s2241_s7 + $0x28] sm:$0xff] }
  0xfa   :  { %v249_v24 = vadd.f32 %v1313_v21, %v239_v22 }
  0xfc   :  { %v251_v25 = vsel %vm250_vm2, %v249_v24, -inf }
  0xfd   :  { %252 = vmax.xlane.f32.xlu0 %v251_v25 }
 0x18a   :  { %v253_v26 = vpop.xlane.xlu0 %252 }
 0x18b   :  { %v254_v27 = vsub.f32 %v249_v24, %v253_v26 }
 0x18d   :  { %v255_v28 = vmul.f32 1.442695, %v254_v27 }
 0x18f   :  { %1631 = vpow2.f32 %v255_v28 }
 0x199   :  { %v1632_v29 = vpop.eup %1631 }
 0x19a   :  { %v257_v30 = vsel %vm250_vm2, %v1632_v29, 0.0 }
 0x19b   :  { %258 = vadd.xlane.f32.xlu0 %v257_v30 }
 0x228   :  { %v259_v31 = vpop.xlane.xlu0 %258 }
 0x229   :  { %1633 = vrcp.f32 %v259_v31 }
 0x233   :  { %v1634_v36 = vpop.eup %1633 }
 0x234   :  { %v261_v37 = vmul.f32 %v1634_v36, %v1632_v29 }
 0x236   :  { %v279_v38 = vrot.slane %v261_v37, %v278_v34  ;;  %v265_v39 = vrot.slane %v261_v37, %v264_v35  ;;  %v272_v41 = vrot.slane %v261_v37, %v271_v40  ;;  %v286_v43 = vrot.slane %v261_v37, %v285_v42  ;;  %v324_v34 = vld [vmem:[%s2241_s7 + $0x30] sm:$0xff] }
 0x237   :  { %v293_v45 = vrot.slane %v261_v37, %v292_v44  ;;  %v300_v47 = vrot.slane %v261_v37, %v299_v46  ;;  %v307_v51 = vrot.slane %v261_v37, %v306_v48  ;;  %v314_v56 = vrot.slane %v261_v37, %v313_v52 }
 0x238   :  { %281 = vbcast.lane.b32.xlu0 %v279_v38, 256  ;;  %267 = vbcast.lane.b32.xlu1 %v265_v39, 256 }
 0x23c   :  { %274 = vbcast.lane.b32.xlu1 %v272_v41, 256 }
 0x240   :  { %288 = vbcast.lane.b32.xlu1 %v286_v43, 256 }
 0x244   :  { %295 = vbcast.lane.b32.xlu1 %v293_v45, 256  ;;  %v325_v45 = vld [vmem:[%s2241_s7 + $0x38] sm:$0xff] }
 0x248   :  { %302 = vbcast.lane.b32.xlu1 %v300_v47, 256 }
 0x24c   :  { %309 = vbcast.lane.b32.xlu1 %v307_v51, 256 }
 0x250   :  { %316 = vbcast.lane.b32.xlu1 %v314_v56, 256 }
 0x2aa   :  { %v268_v59 = vpop.permute.xlu1 %267  ;;  %v282_v62 = vpop.permute.xlu0 %281 }
 0x2ab   :  { %v326_v63 = vmul.f32 %v318_v58, %v268_v59  ;;  %v328_v2 = vmul.f32 %v320_v61, %v282_v62 }
 0x2ad   :  { %v334_v5 = vsel %vm81_vm1, %v326_v63, 0.0  ;;  %v348_v11 = vsel %vm81_vm1, %v328_v2, 0.0 }
 0x2ae   :  { %v275_v0 = vpop.permute.xlu1 %274  ;;  %v335_v12 = vrot.slane %v334_v5, 4  ;;  %v349_v20 = vrot.slane %v348_v11, 4 }
 0x2af   :  { %v327_v1 = vmul.f32 %v319_v60, %v275_v0 }
 0x2b0   :  { %v336_v22 = vadd.f32 %v335_v12, %v334_v5  ;;  %v350_v29 = vadd.f32 %v349_v20, %v348_v11  ;;  %v391_v20 = vld [vmem:[%s2242_s3 + $0x8] sm:$0xff] }
 0x2b1   :  { %v341_v7 = vsel %vm81_vm1, %v327_v1, 0.0 }
 0x2b2   :  { %v342_v8 = vrot.slane %v341_v7, 4  ;;  %v289_v9 = vpop.permute.xlu1 %288  ;;  %v337_v31 = vrot.slane %v336_v22, 2  ;;  %v351_v40 = vrot.slane %v350_v29, 2 }
 0x2b3   :  { %v329_v10 = vmul.f32 %v321_v4, %v289_v9 }
 0x2b4   :  { %v343_v16 = vadd.f32 %v342_v8, %v341_v7  ;;  %v338_v43 = vadd.f32 %v337_v31, %v336_v22  ;;  %v352_v52 = vadd.f32 %v351_v40, %v350_v29  ;;  %v393_v29 = vld [vmem:[%s2242_s3 + $0x18] sm:$0xff] }
 0x2b5   :  { %v355_v14 = vsel %vm81_vm1, %v329_v10, 0.0 }
 0x2b6   :  { %v356_v18 = vrot.slane %v355_v14, 4  ;;  %v296_v19 = vpop.permute.xlu1 %295  ;;  %v344_v25 = vrot.slane %v343_v16, 2  ;;  %v339_v55 = vrot.slane %v338_v43, 1  ;;  %v353_v63 = vrot.slane %v352_v52, 1 }
 0x2b7   :  { %v330_v21 = vmul.f32 %v322_v13, %v296_v19  ;;  %v390_v19 = vld [vmem:[%s2242_s3] sm:$0xff] }
 0x2b8   :  { %v357_v26 = vadd.f32 %v356_v18, %v355_v14  ;;  %v345_v36 = vadd.f32 %v344_v25, %v343_v16  ;;  %v340_v1 = vadd.f32 %v339_v55, %v338_v43  ;;  %v354_v11 = vadd.f32 %v353_v63, %v352_v52  ;;  %v895_v52 = vld [vmem:[%s2207_s11] sm:$0xff] }
 0x2b9   :  { %v362_v24 = vsel %vm81_vm1, %v330_v21, 0.0 }
 0x2ba   :  { %v363_v27 = vrot.slane %v362_v24, 4  ;;  %v303_v28 = vpop.permute.xlu1 %302  ;;  %v358_v37 = vrot.slane %v357_v26, 2  ;;  %v346_v47 = vrot.slane %v345_v36, 1 }
 0x2bb   :  { %v331_v30 = vmul.f32 %v323_v23, %v303_v28  ;;  %v392_v28 = vld [vmem:[%s2242_s3 + $0x10] sm:$0xff] }
 0x2bc   :  { %v364_v33 = vadd.f32 %v363_v27, %v362_v24  ;;  %v359_v48 = vadd.f32 %v358_v37, %v357_v26  ;;  %v347_v59 = vadd.f32 %v346_v47, %v345_v36  ;;  %v1562_v26 = vpack.c.bf16 %v391_v20, %v390_v19  ;;  %v575_v36 = vld [vmem:[%s2208_s12 + $0x10] sm:$0xff]  ;;  %v1316_v47 = vld [vmem:[%s2243_s28] ss:$0 sm:$0xff] }
 0x2bd   :  { %v369_v35 = vsel %vm81_vm1, %v331_v30, 0.0  ;;  %v1565_v31 = vpack.c.bf16 %v393_v29, %v392_v28 }
 0x2be   :  { %v370_v38 = vrot.slane %v369_v35, 4  ;;  %v310_v39 = vpop.permute.xlu1 %309  ;;  %v365_v41 = vrot.slane %v364_v33, 2  ;;  %v360_v60 = vrot.slane %v359_v48, 1  ;;  %v407_v7 = vsel %vm406_vm3, %v347_v59, %v340_v1  ;;  %v740_v59 = vld [vmem:[%s2209_s13 + $0x18] sm:$0xff] }
 0x2bf   :  { %v332_v42 = vmul.f32 %v324_v34, %v310_v39  ;;  %v409_v16 = vsel %vm408_vm4, %v354_v11, %v407_v7  ;;  %v574_v34 = vld [vmem:[%s2208_s12 + $0x8] sm:$0xff]  ;;  %v977_v1 = vld [vmem:[%s2210_s14 + $0x18] sm:$0xff]  ;;  %v1062_v7 = vld [vmem:[%s2215_s19] sm:$0xff] }
 0x2c0   :  { %v371_v44 = vadd.f32 %v370_v38, %v369_v35  ;;  %v366_v53 = vadd.f32 %v365_v41, %v364_v33  ;;  %v361_v8 = vadd.f32 %v360_v60, %v359_v48  ;;  %v573_v33 = vld [vmem:[%s2208_s12] sm:$0xff]  ;;  %v572_v39 = vld [vmem:[%s2205_s9 + $0x8] sm:$0xff]  ;;  %v1065_v11 = vld [vmem:[%s2215_s19 + $0x18] sm:$0xff] }
 0x2c1   :  { %v376_v46 = vsel %vm81_vm1, %v332_v42, 0.0  ;;  %v1568_v35 = vpack.c.bf16 %v574_v34, %v573_v33  ;;  %v571_v38 = vld [vmem:[%s2205_s9] sm:$0xff]  ;;  %v736_v42 = vld [vmem:[%s2206_s10 + $0x8] sm:$0xff] }
 0x2c2   :  { %v372_v49 = vrot.slane %v371_v44, 2  ;;  %v377_v50 = vrot.slane %v376_v46, 4  ;;  %v317_v51 = vpop.permute.xlu1 %316  ;;  %v367_v0 = vrot.slane %v366_v53, 1  ;;  %v411_v21 = vsel %vm410_vm5, %v361_v8, %v409_v16  ;;  %v735_v41 = vld [vmem:[%s2206_s10] sm:$0xff]  ;;  %v1063_v8 = vld [vmem:[%s2215_s19 + $0x8] sm:$0xff] }
 0x2c3   :  { %v333_v54 = vmul.f32 %v325_v45, %v317_v51  ;;  %v1574_v40 = vpack.c.bf16 %v572_v39, %v571_v38  ;;  %v1583_v43 = vpack.c.bf16 %v736_v42, %v735_v41  ;;  %v737_v48 = vld [vmem:[%s2209_s13] sm:$0xff]  ;;  %v738_v51 = vld [vmem:[%s2209_s13 + $0x8] sm:$0xff] }
 0x2c4   :  { %v373_v56 = vadd.f32 %v372_v49, %v371_v44  ;;  %v378_v57 = vadd.f32 %v377_v50, %v376_v46  ;;  %v368_v12 = vadd.f32 %v367_v0, %v366_v53  ;;  %v896_v53 = vld [vmem:[%s2207_s11 + $0x8] sm:$0xff]  ;;  %v1577_v55 = vpack.c.bf16 %v738_v51, %v737_v48  ;;  %v976_v0 = vld [vmem:[%s2210_s14 + $0x10] sm:$0xff]  ;;  %v1325_v38 = vld [vmem:[%s2213_s17] ss:$0 sm:$0xff] }
 0x2c5   :  { %v383_v58 = vsel %vm81_vm1, %v333_v54, 0.0  ;;  %1575 = vmatpush3.bf16.msra.mxu1 %v1574_v40 }
 0x2c6   :  { %v379_v61 = vrot.slane %v378_v57, 2  ;;  %v384_v62 = vrot.slane %v383_v58, 4  ;;  %v374_v2 = vrot.slane %v373_v56, 1  ;;  %v413_v23 = vsel %vm412_vm6, %v368_v12, %v411_v21  ;;  %1576 = vmatprep.subr.bf16.mxu1 %v1719_v3 }
 0x2c8   :  { %v380_v4 = vadd.f32 %v379_v61, %v378_v57  ;;  %v385_v5 = vadd.f32 %v384_v62, %v383_v58  ;;  %v375_v13 = vadd.f32 %v374_v2, %v373_v56  ;;  %v1586_v56 = vpack.c.bf16 %v896_v53, %v895_v52  ;;  %v739_v58 = vld [vmem:[%s2209_s13 + $0x10] sm:$0xff]  ;;  %v974_v61 = vld [vmem:[%s2210_s14] sm:$0xff]  ;;  %v975_v62 = vld [vmem:[%s2210_s14 + $0x8] sm:$0xff]  ;;  %s1723_s13 = smov [#allocation4]  }
 0x2c9   :  { %v1580_v60 = vpack.c.bf16 %v740_v59, %v739_v58  ;;  %v1589_v63 = vpack.c.bf16 %v975_v62, %v974_v61  ;;  %v1592_v2 = vpack.c.bf16 %v977_v1, %v976_v0  ;;  %v1179_v1 = vld [vmem:[%s2217_s21] sm:$0xff]  ;;  %s1276_s9 = sshll.u32 %s1723_s13, 4  ;;  %s1277_s9 = int_to_ptr.vmem [resolvable:$true] %s1276_s9 }
 0x2ca   :  { %v381_v9 = vrot.slane %v380_v4, 1  ;;  %v386_v10 = vrot.slane %v385_v5, 2  ;;  %v415_v25 = vsel %vm414_vm7, %v375_v13, %v413_v23  ;;  %v1319_v13 = vld [vmem:[%s2211_s15] ss:$0 sm:$0xff]  ;;  %p1654_p1 = scmp.lt.s32.totalorder %s1277_s9, %s1277_s9 }
 0x2cc   :  { %v387_v14 = vadd.f32 %v386_v10, %v385_v5  ;;  %v382_v18 = vadd.f32 %v381_v9, %v380_v4  ;;  %v1064_v9 = vld [vmem:[%s2215_s19 + $0x10] sm:$0xff]  ;;  %v1595_v10 = vpack.c.bf16 %v1063_v8, %v1062_v7  ;;  %v1183_v8 = vld [vmem:[%s2217_s21 + $0x20] sm:$0xff] }
 0x2ce   :  { %v388_v22 = vrot.slane %v387_v14, 1  ;;  %v417_v27 = vsel %vm416_vm8, %v382_v18, %v415_v25  ;;  %v1323_v25 = vld [vmem:[%s2212_s16] ss:$0 sm:$0xff] }
 0x2d0   :  { %v389_v24 = vadd.f32 %v388_v22, %v387_v14 }
 0x2d2   :  { %v419_v30 = vsel %vm418_vm9, %v389_v24, %v417_v27 }
 0x2d3   :  { %1430 = vmatmul.mubr.msk.f32.vlgmr.msra.gmra.mrb[4].mxu0 %vm81_vm1, %v419_v30 }
 0x2d4   :  { %1563 = vmatpush3.bf16.msra.mxu0 %v1562_v26  ;;  %1440 = vmatprep.mubr.msk.f32.mxu0 %vm1720_vm0, %v1721_v6 }
 0x2d5   :  { %1564 = vmatprep.subr.bf16.mxu0 %v1719_v3 }
 0x2d8   :  { %1566 = vmatpush3.bf16.msra.mxu0 %v1565_v31 }
 0x2d9   :  { %1567 = vmatprep.subr.bf16.mxu0 %v1719_v3 }
 0x2db   :  { %1441 = vmatmul.mubr.msk.f32.vlgmr.msra.gmra.mrb[6].mxu0 %vm81_vm1, %v1898_v17  ;;  %v576_v17 = vld [vmem:[%s2208_s12 + $0x18] sm:$0xff]  ;;  %s1649_s12 = scalar_lea.vmem %s1277_s9, 128 }
 0x2dc   :  { %1451 = vmatprep.mubr.msk.f32.mxu0 %vm1720_vm0, %v1721_v6  ;;  %1569 = vmatpush3.bf16.msra.mxu0 %v1568_v35  ;;  %v1571_v37 = vpack.c.bf16 %v576_v17, %v575_v36  ;;  %v1327_v35 = vld [vmem:[%s2214_s18] ss:$0 sm:$0xff]  ;;  %p1650_p0 = scmp.ne.s32.totalorder %s1277_s9, %s1649_s12  ;;  %p1655_p2 = scmp.lt.s32.totalorder %s1649_s12, %s1649_s12 }
 0x2dd   :  { %1570 = vmatprep.subr.bf16.mxu0 %v1719_v3 }
 0x2de   :  { %p1656_p3 = por %p1655_p2, %p1654_p1 }
 0x2e0   :  { %1572 = vmatpush3.bf16.msra.mxu0 %v1571_v37  ;;  %p1657_p4 = pnand %p1656_p3, %p1650_p0 }
 0x2e1   :  { %1582 = vmatprep.subr.bf16.mxu0 %v1719_v3 }
 0x2e3   :  { %1452 = vmatmul.mubr.msk.f32.vlgmr.msra.gmra.mrb[8].mxu0 %vm81_vm1, %v1891_v15 }
 0x2e4   :  { %1584 = vmatpush3.bf16.msra.mxu0 %v1583_v43  ;;  %1476 = vmatprep.mubr.msk.f32.mxu0 %vm1720_vm0, %v1721_v6 }
 0x2e5   :  { %1585 = vmatprep.subr.bf16.mxu0 %v1719_v3 }
 0x3a6   :  { %v488_v44 = vpop.f32.mrb[4].mxu0 }
 0x3a7   :  { %v1431_v45 = vpop.f32.mrb[5].mxu0 }
 0x3ae   :  { %v558_v46 = vpop.f32.mrb[6].mxu0 }
 0x3af   :  { %v559_v49 = vadd.f32 %v558_v46, %v488_v44  ;;  %v1442_v50 = vpop.f32.mrb[7].mxu0 }
 0x3b1   :  { %v569_v54 = vadd.f32 %v1316_v47, %v559_v49  ;;  %v1329_v49 = vld [vmem:[%s2216_s20] ss:$0 sm:$0xff] }
 0x3b3   :  { %v570_v57 = vmax.f32 %v569_v54, 0.0 }
 0x3b5   :  { %1459 = vmatmul.mubr.msk.f32.vlgmr.msra.gmra.mrb[0].mxu1 %vm647_vm10, %v570_v57  ;;  %1477 = vmatmul.mubr.msk.f32.vlgmr.msra.gmra.mrb[10].mxu0 %vm647_vm10, %v570_v57 }
 0x3b6   :  { %1578 = vmatpush3.bf16.msra.mxu1 %v1577_v55  ;;  %1587 = vmatpush3.bf16.msra.mxu0 %v1586_v56  ;;  %v643_v4 = vpop.f32.mrb[8].mxu0 }
 0x3b7   :  { %1579 = vmatprep.subr.bf16.mxu1 %v1719_v3  ;;  %1483 = vmatprep.mubr.msk.f32.mxu0 %vm1720_vm0, %v1721_v6  ;;  %v1453_v5 = vpop.f32.mrb[9].mxu0 }
 0x3b8   :  { %1469 = vmatprep.mubr.msk.f32.mxu1 %vm1720_vm0, %v1721_v6  ;;  %1594 = vmatprep.subr.bf16.mxu0 %v1719_v3 }
 0x3b9   :  { %1484 = vmatmul.mubr.msk.f32.vlgmr.msra.gmra.mrb[12].mxu0 %vm647_vm10, %v570_v57 }
 0x3ba   :  { %1581 = vmatpush3.bf16.msra.mxu1 %v1580_v60  ;;  %1505 = vmatprep.mubr.msk.f32.mxu0 %vm1720_vm0, %v1721_v6  ;;  %v1157_v60 = vand.u32 127, %v262_v32  ;;  %v1182_v32 = vld [vmem:[%s2217_s21 + $0x18] sm:$0xff] }
 0x3bb   :  { %1588 = vmatprep.subr.bf16.mxu1 %v1719_v3  ;;  %1596 = vmatpush3.bf16.msra.mxu0 %v1595_v10 }
 0x3bc   :  { %1597 = vmatprep.subr.bf16.mxu0 %v1719_v3 }
 0x3bd   :  { %1470 = vmatmul.mubr.msk.f32.vlgmr.msra.gmra.mrb[2].mxu1 %vm81_vm1, %v1891_v15 }
 0x3be   :  { %1590 = vmatpush3.bf16.msra.mxu1 %v1589_v63  ;;  %1494 = vmatprep.mubr.msk.f32.mxu1 %vm1720_vm0, %v1721_v6 }
 0x3bf   :  { %1591 = vmatprep.subr.bf16.mxu1 %v1719_v3 }
 0x3c2   :  { %1593 = vmatpush3.bf16.msra.mxu1 %v1592_v2  ;;  %v1180_v2 = vld [vmem:[%s2217_s21 + $0x8] sm:$0xff] }
 0x3c3   :  { %1600 = vmatprep.subr.bf16.mxu1 %v1719_v3  ;;  %v1601_v5 = vpack.c.bf16 %v1180_v2, %v1179_v1 }
 0x3c5   :  { %1495 = vmatmul.mubr.msk.f32.vlgmr.msra.gmra.mrb[4].mxu1 %vm81_vm1, %v1891_v15 }
 0x3c6   :  { %1540 = vmatprep.mubr.msk.f32.mxu1 %vm1720_vm0, %v1721_v6  ;;  %v1598_v6 = vpack.c.bf16 %v1065_v11, %v1064_v9  ;;  %1602 = vmatpush3.bf16.msra.mxu1 %v1601_v5  ;;  %v1184_v9 = vld [vmem:[%s2217_s21 + $0x28] sm:$0xff]  ;;  %v1185_v11 = vld [vmem:[%s2217_s21 + $0x30] sm:$0xff] }
 0x3c7   :  { %1603 = vmatprep.subr.bf16.mxu1 %v1719_v3  ;;  %v1607_v10 = vpack.c.bf16 %v1184_v9, %v1183_v8 }
 0x3c8   :  { %1599 = vmatpush3.bf16.msra.mxu0 %v1598_v6  ;;  %v1186_v6 = vld [vmem:[%s2217_s21 + $0x38] sm:$0xff] }
 0x488   :  { %v717_v12 = vpop.f32.mrb[0].mxu1  ;;  %v877_v14 = vpop.f32.mrb[10].mxu0 }
 0x489   :  { %v718_v16 = vadd.f32 %v717_v12, %v643_v4  ;;  %v1460_v18 = vpop.f32.mrb[1].mxu1  ;;  %v1478_v19 = vpop.f32.mrb[11].mxu0  ;;  %v1181_v4 = vld [vmem:[%s2217_s21 + $0x10] sm:$0xff]  ;;  %v1610_v12 = vpack.c.bf16 %v1186_v6, %v1185_v11 }
 0x48a   :  { %v1604_v7 = vpack.c.bf16 %v1182_v32, %v1181_v4  ;;  %v1189_v18 = vld [vmem:[%s2217_s21 + $0x50] sm:$0xff]  ;;  %v1190_v19 = vld [vmem:[%s2217_s21 + $0x58] sm:$0xff] }
 0x48b   :  { %v728_v20 = vadd.f32 %v1319_v13, %v718_v16  ;;  %v1187_v13 = vld [vmem:[%s2217_s21 + $0x40] sm:$0xff] }
 0x48c   :  { %v970_v21 = vpop.f32.mrb[12].mxu0  ;;  %1605 = vmatpush3.bf16.msra.mxu1 %v1604_v7 }
 0x48d   :  { %v1320_v22 = vmul.f32 -1.442695, %v728_v20  ;;  %v1485_v23 = vpop.f32.mrb[13].mxu0  ;;  %v971_v40 = vadd.f32 %v1325_v38, %v970_v21  ;;  %1606 = vmatprep.subr.bf16.mxu1 %v1719_v3  ;;  %v1616_v20 = vpack.c.bf16 %v1190_v19, %v1189_v18  ;;  %v1191_v21 = vld [vmem:[%s2217_s21 + $0x60] sm:$0xff] }
 0x48f   :  { %1635 = vpow2.f32 %v1320_v22  ;;  %v1192_v22 = vld [vmem:[%s2217_s21 + $0x68] sm:$0xff] }
 0x490   :  { %v807_v24 = vpop.f32.mrb[2].mxu1  ;;  %1608 = vmatpush3.bf16.msra.mxu1 %v1607_v10  ;;  %v1619_v23 = vpack.c.bf16 %v1192_v22, %v1191_v21 }
 0x491   :  { %v878_v26 = vadd.f32 %v877_v14, %v807_v24  ;;  %v1471_v27 = vpop.f32.mrb[3].mxu1  ;;  %1609 = vmatprep.subr.bf16.mxu1 %v1719_v3  ;;  %v1188_v14 = vld [vmem:[%s2217_s21 + $0x48] sm:$0xff] }
 0x492   :  { %v1613_v16 = vpack.c.bf16 %v1188_v14, %v1187_v13 }
 0x493   :  { %v888_v28 = vadd.f32 %v1323_v25, %v878_v26 }
 0x494   :  { %1611 = vmatpush3.bf16.msra.mxu1 %v1610_v12 }
 0x495   :  { %v1324_v29 = vmul.f32 -1.442695, %v888_v28  ;;  %1612 = vmatprep.subr.bf16.mxu1 %v1719_v3  ;;  %v1193_v28 = vld [vmem:[%s2217_s21 + $0x70] sm:$0xff] }
 0x497   :  { %1637 = vpow2.f32 %v1324_v29  ;;  %v1194_v29 = vld [vmem:[%s2217_s21 + $0x78] sm:$0xff] }
 0x498   :  { %v1051_v30 = vpop.f32.mrb[4].mxu1  ;;  %1614 = vmatpush3.bf16.msra.mxu1 %v1613_v16 }
 0x499   :  { %v1636_v31 = vpop.eup %1635  ;;  %v1496_v33 = vpop.f32.mrb[5].mxu1  ;;  %v1052_v37 = vadd.f32 %v1327_v35, %v1051_v30  ;;  %1615 = vmatprep.subr.bf16.mxu1 %v1719_v3  ;;  %v1622_v30 = vpack.c.bf16 %v1194_v29, %v1193_v28 }
 0x49a   :  { %v732_v34 = vadd.f32 1.0, %v1636_v31 }
 0x49c   :  { %1639 = vrcp.f32 %v732_v34  ;;  %1617 = vmatpush3.bf16.msra.mxu1 %v1616_v20 }
 0x49d   :  { %1618 = vmatprep.subr.bf16.mxu1 %v1719_v3 }
 0x4a0   :  { %1620 = vmatpush3.bf16.msra.mxu1 %v1619_v23 }
 0x4a1   :  { %v1638_v36 = vpop.eup %1637  ;;  %1621 = vmatprep.subr.bf16.mxu1 %v1719_v3 }
 0x4a2   :  { %v892_v17 = vadd.f32 1.0, %v1638_v36  ;;  %v1722_v36 = vmov 1.0  }
 0x4a4   :  { %1641 = vrcp.f32 %v892_v17  ;;  %1623 = vmatpush3.bf16.msra.mxu1 %v1622_v30 }
 0x4a6   :  { %v1640_v39 = vpop.eup %1639 }
 0x4a7   :  { %v1055_v41 = vmul.f32 %v1640_v39, %v1052_v37 }
 0x4a9   :  { %v1056_v42 = vadd.f32 %v1055_v41, %v971_v40 }
 0x4ab   :  { %1643 = vtanh.f32 %v1056_v42 }
 0x4ae   :  { %v1642_v43 = vpop.eup %1641 }
 0x4af   :  { %v1058_v44 = vsub.f32 1.0, %v1642_v43  ;;  %v1060_v47 = vmul.f32 %v1642_v43, %v1891_v15 }
 0x4b5   :  { %v1644_v45 = vpop.eup %1643 }
 0x4b6   :  { %v1059_v46 = vmul.f32 %v1644_v45, %v1058_v44 }
 0x4b8   :  { %v1061_v48 = vadd.f32 %v1060_v47, %v1059_v46 }
 0x4ba   :  { %1506 = vmatmul.mubr.msk.f32.vlgmr.msra.gmra.mrb[14].mxu0 %vm81_vm1, %v1061_v48  ;;  %1267 = vst.msk [vmem:[#allocation3] sm:$0xff] %vm81_vm1, %v1061_v48  ;;  %1269 = vst.msk [vmem:[#allocation8] sm:$0xff] %vm81_vm1, %v1061_v48 }
 0x58d   :  { %v1142_v50 = vpop.f32.mrb[14].mxu0 }
 0x58e   :  { %v1143_v51 = vadd.f32 %v1329_v49, %v1142_v50  ;;  %v1507_v52 = vpop.f32.mrb[15].mxu0 }
 0x590   :  { %1146 = vmax.xlane.f32.xlu1 %v1143_v51 }
 0x61d   :  { %v1147_v53 = vpop.xlane.xlu1 %1146 }
 0x61e   :  { %v1148_v54 = vsub.f32 %v1143_v51, %v1147_v53 }
 0x620   :  { %v1149_v55 = vmul.f32 1.442695, %v1148_v54 }
 0x622   :  { %1645 = vpow2.f32 %v1149_v55 }
 0x62c   :  { %v1646_v15 = vpop.eup %1645 }
 0x62d   :  { %1151 = vadd.xlane.f32.xlu0 %v1646_v15 }
 0x6ba   :  { %v1152_v56 = vpop.xlane.xlu0 %1151 }
 0x6bb   :  { %1647 = vlog2.f32 %v1152_v56 }
 0x6c5   :  { %v1648_v57 = vpop.eup %1647 }
 0x6c6   :  { %v1154_v58 = vmul.f32 0.6931472, %v1648_v57 }
 0x6c8   :  { %v1155_v59 = vsub.f32 %v1148_v54, %v1154_v58 }
 0x6ca   :  { %1158 = vmax.xlane.f32.xlu0 %v1155_v59  ;;  %1265 = vst [vmem:[#allocation4] sm:$0xff] %v1155_v59 }
 0x757   :  { %v1159_v61 = vpop.xlane.xlu0 %1158 }
 0x758   :  { %vm1160_vm11 = vcmp.eq.f32.partialorder %v1155_v59, %v1159_v61 }
 0x759   :  { %v1161_v62 = vsel %vm1160_vm11, %v1157_v60, 128 }
 0x75a   :  { %v1163_v63 = vshra.s32 %v1161_v62, 16  ;;  %v1162_v24 = vand.u32 65535, %v1161_v62 }
 0x75c   :  { %v1165_v0 = vcvt.s32.f32 %v1163_v63  ;;  %v1164_v26 = vcvt.s32.f32 %v1162_v24 }
 0x75e   :  { %1166 = vmin.xlane.f32.xlu1 %v1165_v0 }
 0x7eb   :  { %v1167_v25 = vpop.xlane.xlu1 %1166 }
 0x7ec   :  { %vm1168_vm12 = vcmp.eq.f32.partialorder %v1165_v0, %v1167_v25  ;;  %v1173_v31 = vcvt.f32.s32 %v1167_v25 }
 0x7ed   :  { %v1169_v27 = vsel %vm1168_vm12, %v1164_v26, inf }
 0x7ee   :  { %1170 = vmin.xlane.f32.xlu0 %v1169_v27  ;;  %v1174_v34 = vshll.u32 %v1173_v31, 16 }
 0x87b   :  { %v1171_v33 = vpop.xlane.xlu0 %1170 }
 0x87c   :  { %v1172_v3 = vcvt.f32.s32 %v1171_v33 }
 0x87e   :  { %v1175_v35 = vadd.s32 %v1174_v34, %v1172_v3 }
 0x880   :  { %vm1176_vm13 = vcmp.eq.s32.totalorder %v1157_v60, %v1175_v35 }
 0x881   :  { %1541 = vmatmul.mubr.msk.f32.vlgmr.msra.gmra.mrb[6].mxu1 %vm1176_vm13, %v1722_v36 }
 0x882   :  { %1660 = shalt.err (!%p1657_p4)
}
 0x883   :  { %s1661_s14 = scalar_lea.hbm %s2218_s22, 128 }
 0x884   :  { %p1662_p5 = scmp.ne.s32.totalorder %s2218_s22, %s1661_s14  ;;  %p1665_p6 = scmp.lt.u32.totalorder %s1661_s14, %s2218_s22 }
 0x886   :  { %p1667_p7 = pnand %p1665_p6, %p1662_p5 }
 0x888   :  { %1670 = shalt.err (!%p1667_p7)
}
 0x889   :  { %1279 = dma.vmem_to_hbm [thread:$0]  %s1277_s9, 128, %s2218_s22, [#allocation5]  }
 0x88a   :  { %s1724_s30 = smov [#allocation6]   ;;  %s1725_s25 = smov [#allocation8]  }
 0x88b   :  { %s1286_s3 = sshll.u32 %s1724_s30, 4  ;;  %s1296_s19 = sshll.u32 %s1725_s25, 4  ;;  %s1287_s3 = int_to_ptr.vmem [resolvable:$true] %s1286_s3  ;;  %s2163_s19 = int_to_ptr.vmem [resolvable:$true] %s1296_s19 }
 0x88c   :  { %s1671_s8 = scalar_lea.vmem %s1287_s3, 128  ;;  %p1676_p9 = scmp.lt.s32.totalorder %s1287_s3, %s1287_s3 }
 0x88d   :  { %p1672_p8 = scmp.ne.s32.totalorder %s1287_s3, %s1671_s8  ;;  %p1677_p10 = scmp.lt.s32.totalorder %s1671_s8, %s1671_s8 }
 0x88f   :  { %p1678_p11 = por %p1677_p10, %p1676_p9 }
 0x891   :  { %p1679_p12 = pnand %p1678_p11, %p1672_p8 }
 0x954   :  { %v1261_v17 = vpop.f32.mrb[6].mxu1 }
 0x955   :  { %1266 = vst.msk [vmem:[#allocation2] sm:$0xff] %vm81_vm1, %v1261_v17  ;;  %1268 = vst.msk [vmem:[#allocation6] sm:$0xff] %vm81_vm1, %v1261_v17  ;;  %v1542_v37 = vpop.f32.mrb[7].mxu1 }
 0x956   :  { %1682 = shalt.err (!%p1679_p12)
}
 0x957   :  { %s1683_s4 = scalar_lea.hbm %s2219_s23, 128 }
 0x958   :  { %p1684_p13 = scmp.ne.s32.totalorder %s2219_s23, %s1683_s4  ;;  %p1687_p0 = scmp.lt.u32.totalorder %s1683_s4, %s2219_s23 }
 0x95a   :  { %p1689_p1 = pnand %p1687_p0, %p1684_p13 }
 0x95c   :  { %1692 = shalt.err (!%p1689_p1)
}
 0x95d   :  { %1289 = dma.vmem_to_hbm [thread:$0]  %s1287_s3, 128, %s2219_s23, [#allocation7]  }
 0x95e   :  { %s1693_s5 = scalar_lea.vmem %s2163_s19, 128  ;;  %p1698_p3 = scmp.lt.s32.totalorder %s2163_s19, %s2163_s19 }
 0x95f   :  { %p1694_p2 = scmp.ne.s32.totalorder %s2163_s19, %s1693_s5  ;;  %p1699_p4 = scmp.lt.s32.totalorder %s1693_s5, %s1693_s5 }
 0x961   :  { %p1700_p5 = por %p1699_p4, %p1698_p3 }
 0x963   :  { %p1701_p6 = pnand %p1700_p5, %p1694_p2 }
 0x965   :  { %1704 = shalt.err (!%p1701_p6)
}
 0x966   :  { %s1705_s13 = scalar_lea.hbm %s2220_s24, 128 }
 0x967   :  { %p1706_p7 = scmp.ne.s32.totalorder %s2220_s24, %s1705_s13  ;;  %p1709_p8 = scmp.lt.u32.totalorder %s1705_s13, %s2220_s24 }
 0x969   :  { %p1711_p9 = pnand %p1709_p8, %p1706_p7 }
 0x96b   :  { %1714 = shalt.err (!%p1711_p9)
}
 0x96c   :  { %1299 = dma.vmem_to_hbm [thread:$0]  %s2163_s19, 128, %s2220_s24, [#allocation7]  }
 0x96d   :  { %1715 = dma.done.wait [#allocation5], 128  }
 0x96e   :  { %1716 = vsyncadd [#allocation5], 4294967168 }
 0x96f   :  { %1717 = dma.done.wait [#allocation7], 256  }
 0x970   :  { %1718 = vsyncadd [#allocation7], 4294967040 }
 0x971   :  { %1309 = vsyncpa [#allocation5], 1 }
 0x972   :  { %1310 = vsyncpa [#allocation7], 1 }

</bundles_post_ra>
